<compile_context>
chip_gen: v5e
topology: v5e:2x2
jax: 0.10.0
libtpu: 0.0.40
codegen_flags: <defaults>
</compile_context>

<pallas_src>
import jax
import jax.numpy as jnp
from jax import lax
from jax.experimental import pallas as pl
from jax.experimental.pallas import tpu as pltpu

EPS = 1e-5        # nn.BatchNorm2d default
TM_MAX = 512      # max row tile (sublane axis)
TK_MAX = 512      # max K tile for the MXU reduction axis
LANE = 128        # lane width; channel / K axes padded to a multiple of this


def _round_up(x, m):
    return ((x + m - 1) // m) * m


def _row_tile(m):
    return TM_MAX if m >= TM_MAX else max(8, _round_up(m, 8))


def _k_tile(kp):
    if kp <= TK_MAX:
        return kp
    for cand in range(TK_MAX, 0, -LANE):
        if kp % cand == 0:
            return cand
    return LANE


# ---------------- Pallas kernels ----------------

def _mm_stats_kernel(a_ref, b_ref, o_ref, ps_ref, pq_ref, acc_ref):
    """K-tiled bf16 matmul with f32 accumulator; on the last K step also emits
    per-row-tile partial channel sums / sums-of-squares (folded to 8 sublanes)."""
    k = pl.program_id(1)

    @pl.when(k == 0)
    def _():
        acc_ref[...] = jnp.zeros_like(acc_ref)

    acc_ref[...] += jnp.dot(a_ref[...], b_ref[...],
                            preferred_element_type=jnp.float32)

    @pl.when(k == pl.num_programs(1) - 1)
    def _():
        y = acc_ref[...]
        o_ref[...] = y
        cp = y.shape[1]
        # fold rows onto 8 sublanes: pure vreg adds, no cross-lane reduce
        ps_ref[...] = y.reshape(-1, 8, cp).sum(axis=0)
        pq_ref[...] = (y * y).reshape(-1, 8, cp).sum(axis=0)


def _scale_shift_relu_kernel(x_ref, sc_ref, sh_ref, o_ref):
    o_ref[...] = jnp.maximum(x_ref[...] * sc_ref[...] + sh_ref[...], 0.0)


def _join_proj_kernel(a_ref, sa_ref, ha_ref, s_ref, ss_ref, hs_ref, o_ref):
    # ReLU( BN2(a) + BN_s(shortcut) ) with BN folded to scale/shift
    o_ref[...] = jnp.maximum(a_ref[...] * sa_ref[...] + ha_ref[...]
                             + s_ref[...] * ss_ref[...] + hs_ref[...], 0.0)


def _join_id_kernel(a_ref, sa_ref, ha_ref, s_ref, o_ref):
    # ReLU( BN2(a) + identity-shortcut )  (no shortcut BN math)
    o_ref[...] = jnp.maximum(a_ref[...] * sa_ref[...] + ha_ref[...] + s_ref[...], 0.0)


# ---------------- Pallas wrappers ----------------

def matmul_stats(a, b, m_true):
    """y = a @ b on the MXU (bf16 inputs, f32 accumulation), with per-channel
    batch sum / sum-of-squares fused into the epilogue.
    a: [M, K] f32, b: [K, C] f32  ->  (y [Mp, Cp] f32, mean [Cp], var [Cp])."""
    M, K = a.shape
    C = b.shape[1]
    Cp = _round_up(C, LANE)
    Kp = _round_up(K, LANE)
    tm = _row_tile(M)
    Mp = _round_up(M, tm)
    tk = _k_tile(Kp)
    gm, gk = Mp // tm, Kp // tk

    a_p = jnp.pad(a, ((0, Mp - M), (0, Kp - K))).astype(jnp.bfloat16)
    b_p = jnp.pad(b, ((0, Kp - K), (0, Cp - C))).astype(jnp.bfloat16)

    y, ps, pq = pl.pallas_call(
        _mm_stats_kernel,
        out_shape=(jax.ShapeDtypeStruct((Mp, Cp), jnp.float32),
                   jax.ShapeDtypeStruct((8 * gm, Cp), jnp.float32),
                   jax.ShapeDtypeStruct((8 * gm, Cp), jnp.float32)),
        grid=(gm, gk),
        in_specs=[pl.BlockSpec((tm, tk), lambda i, k: (i, k)),
                  pl.BlockSpec((tk, Cp), lambda i, k: (k, 0))],
        out_specs=(pl.BlockSpec((tm, Cp), lambda i, k: (i, 0)),
                   pl.BlockSpec((8, Cp), lambda i, k: (i, 0)),
                   pl.BlockSpec((8, Cp), lambda i, k: (i, 0))),
        scratch_shapes=[pltpu.VMEM((tm, Cp), jnp.float32)],
        compiler_params=pltpu.CompilerParams(
            dimension_semantics=("parallel", "arbitrary")),
    )(a_p, b_p)

    s = jnp.sum(ps, axis=0)
    sq = jnp.sum(pq, axis=0)
    mean = s / m_true
    # TODO(synk): switch to a shifted / two-pass variance if activations grow large
    # (E[x^2] - mean^2 can cancel); fine for BN-scaled f32 activations here.
    var = jnp.maximum(sq / m_true - mean * mean, 0.0)
    return y, mean, var


def _fold_bn(g, b, mean, var):
    """Fold BN into per-channel scale/shift (padded channels get scale=shift=0)."""
    Cp = mean.shape[0]
    g = g.reshape(1, -1)
    b = b.reshape(1, -1)
    g_p = jnp.pad(g, ((0, 0), (0, Cp - g.shape[1])))
    b_p = jnp.pad(b, ((0, 0), (0, Cp - b.shape[1])))
    scale = g_p * lax.rsqrt(var.reshape(1, -1) + EPS)
    shift = b_p - mean.reshape(1, -1) * scale
    return scale, shift


def bn_relu(y, scale, shift):
    Mp, Cp = y.shape
    tm = _row_tile(Mp)
    row = pl.BlockSpec((tm, Cp), lambda i: (i, 0))
    ch = pl.BlockSpec((1, Cp), lambda i: (0, 0))
    return pl.pallas_call(
        _scale_shift_relu_kernel,
        out_shape=jax.ShapeDtypeStruct((Mp, Cp), jnp.float32),
        grid=(Mp // tm,),
        in_specs=[row, ch, ch],
        out_specs=row,
        compiler_params=pltpu.CompilerParams(dimension_semantics=("parallel",)),
    )(y, scale, shift)


def bn_add_relu_proj(a, sa, ha, s, ss, hs):
    Mp, Cp = a.shape
    tm = _row_tile(Mp)
    row = pl.BlockSpec((tm, Cp), lambda i: (i, 0))
    ch = pl.BlockSpec((1, Cp), lambda i: (0, 0))
    return pl.pallas_call(
        _join_proj_kernel,
        out_shape=jax.ShapeDtypeStruct((Mp, Cp), jnp.float32),
        grid=(Mp // tm,),
        in_specs=[row, ch, ch, row, ch, ch],
        out_specs=row,
        compiler_params=pltpu.CompilerParams(dimension_semantics=("parallel",)),
    )(a, sa, ha, s, ss, hs)


def bn_add_relu_identity(a, sa, ha, s):
    Mp, Cp = a.shape
    tm = _row_tile(Mp)
    row = pl.BlockSpec((tm, Cp), lambda i: (i, 0))
    ch = pl.BlockSpec((1, Cp), lambda i: (0, 0))
    return pl.pallas_call(
        _join_id_kernel,
        out_shape=jax.ShapeDtypeStruct((Mp, Cp), jnp.float32),
        grid=(Mp // tm,),
        in_specs=[row, ch, ch, row],
        out_specs=row,
        compiler_params=pltpu.CompilerParams(dimension_semantics=("parallel",)),
    )(a, sa, ha, s)


# ---------------- JAX glue (im2col, param plumbing) ----------------

def _im2col_3x3(x_nhwc, stride):
    N, H, W, C = x_nhwc.shape
    Ho = (H + 2 - 3) // stride + 1
    Wo = (W + 2 - 3) // stride + 1
    xp = jnp.pad(x_nhwc, ((0, 0), (1, 1), (1, 1), (0, 0)))
    cols = []
    for kh in range(3):
        for kw in range(3):
            cols.append(xp[:, kh:kh + (Ho - 1) * stride + 1:stride,
                              kw:kw + (Wo - 1) * stride + 1:stride, :])
    patches = jnp.stack(cols, axis=3)                      # [N, Ho, Wo, 9, C]
    return patches.reshape(N * Ho * Wo, 9 * C), Ho, Wo


def _w3x3_to_mat(w):   # [Cout, Cin, 3, 3] -> [9*Cin, Cout]  (matches im2col ordering)
    co, ci = w.shape[0], w.shape[1]
    return jnp.transpose(w, (2, 3, 1, 0)).reshape(9 * ci, co)


def resnet_basic_block(x_nchw, params, stride):
    x = jnp.transpose(x_nchw, (0, 2, 3, 1)).astype(jnp.float32)   # NCHW -> NHWC
    N, H, W, Cin = x.shape
    Cout = params["w1"].shape[0]

    # conv1 (+fused stats) -> folded BN1 + ReLU
    # TODO(synk): fuse the 3x3 patch extraction into the conv kernel (9 shifted-slice
    # accumulating matmuls reading NHWC tiles directly) to remove the 9x im2col
    # materialization in HBM.
    p1, Ho, Wo = _im2col_3x3(x, stride)
    M = N * Ho * Wo
    y1, m1, v1 = matmul_stats(p1, _w3x3_to_mat(params["w1"]), M)      # [Mp, Cp]
    sc1, sh1 = _fold_bn(params["g1"], params["b1"], m1, v1)
    z1 = bn_relu(y1, sc1, sh1)                                        # [Mp, Cp]

    # conv2 (+fused stats); BN2 apply is fused into the join kernel below
    z1_act = z1[:M, :Cout].reshape(N, Ho, Wo, Cout)
    p2, _, _ = _im2col_3x3(z1_act, 1)
    y2, m2, v2 = matmul_stats(p2, _w3x3_to_mat(params["w2"]), M)
    sc2, sh2 = _fold_bn(params["g2"], params["b2"], m2, v2)

    Mp, Cp = y2.shape
    if stride != 1 or Cin != Cout:
        # projection shortcut: 1x1 conv (+fused stats) -> folded BN, fused join
        xs = x[:, 0:(Ho - 1) * stride + 1:stride,
                  0:(Wo - 1) * stride + 1:stride, :].reshape(M, Cin)
        ys, ms, vs = matmul_stats(xs, params["ws"].reshape(Cout, Cin).T, M)
        scs, shs = _fold_bn(params["gs"], params["bs"], ms, vs)
        out = bn_add_relu_proj(y2, sc2, sh2, ys, scs, shs)
    else:
        # identity shortcut: dedicated join kernel without shortcut-BN math
        ys = jnp.pad(x.reshape(M, Cin), ((0, Mp - M), (0, Cp - Cin)))
        out = bn_add_relu_identity(y2, sc2, sh2, ys)

    out = out[:M, :Cout].reshape(N, Ho, Wo, Cout)
    return jnp.transpose(out, (0, 3, 1, 2))                          # back to NCHW


# ---------------- pure-JAX reference (module semantics, f32) ----------------

def _ref_block(x_nchw, params, stride):
    x = jnp.transpose(x_nchw, (0, 2, 3, 1)).astype(jnp.float32)

    def conv(xi, w, s, pad):
        w_hwio = jnp.transpose(w, (2, 3, 1, 0))
        return lax.conv_general_dilated(xi, w_hwio, (s, s), [(pad, pad), (pad, pad)],
                                        dimension_numbers=("NHWC", "HWIO", "NHWC"))

    def bn(y, g, b):
        m = jnp.mean(y, axis=(0, 1, 2), keepdims=True)
        v = jnp.var(y, axis=(0, 1, 2), keepdims=True)
        return (y - m) * lax.rsqrt(v + EPS) * g.reshape(1, 1, 1, -1) + b.reshape(1, 1, 1, -1)

    Cin, Cout = params["w1"].shape[1], params["w1"].shape[0]
    y = jnp.maximum(bn(conv(x, params["w1"], stride, 1), params["g1"], params["b1"]), 0.0)
    y = bn(conv(y, params["w2"], 1, 1), params["g2"], params["b2"])
    if stride != 1 or Cin != Cout:
        s = bn(conv(x, params["ws"], stride, 0), params["gs"], params["bs"])
    else:
        s = x
    return jnp.transpose(jnp.maximum(y + s, 0.0), (0, 3, 1, 2))


# ---------------- main ----------------

if __name__ == "__main__":
    key = jax.random.PRNGKey(0)

    def make_params(k, cin, cout):
        k1, k2, k3 = jax.random.split(k, 3)
        return {
            "w1": jax.random.normal(k1, (cout, cin, 3, 3), jnp.float32) * 0.1,
            "w2": jax.random.normal(k2, (cout, cout, 3, 3), jnp.float32) * 0.1,
            "ws": jax.random.normal(k3, (cout, cin, 1, 1), jnp.float32) * 0.1,
            "g1": jnp.ones((1, cout), jnp.float32), "b1": jnp.zeros((1, cout), jnp.float32),
            "g2": jnp.ones((1, cout), jnp.float32), "b2": jnp.zeros((1, cout), jnp.float32),
            "gs": jnp.ones((1, cout), jnp.float32), "bs": jnp.zeros((1, cout), jnp.float32),
        }

    N, H, W = 2, 16, 16
    kA, kB, kxA, kxB = jax.random.split(key, 4)

    # Config A: projection shortcut (stride=2, Cin=4 -> Cout=8)
    paramsA = make_params(kA, 4, 8)
    xA = jax.random.normal(kxA, (N, 4, H, W), jnp.float32)
    outA = jax.block_until_ready(resnet_basic_block(xA, paramsA, 2))
    refA = jax.block_until_ready(_ref_block(xA, paramsA, 2))
    assert outA.shape == (N, 8, H // 2, W // 2), outA.shape
    assert jnp.allclose(outA, refA, rtol=5e-2, atol=5e-2), \
        float(jnp.max(jnp.abs(outA - refA)))

    # Config B: identity shortcut (stride=1, Cin=Cout=8)
    paramsB = make_params(kB, 8, 8)
    xB = jax.random.normal(kxB, (N, 8, H, W), jnp.float32)
    outB = jax.block_until_ready(resnet_basic_block(xB, paramsB, 1))
    refB = jax.block_until_ready(_ref_block(xB, paramsB, 1))
    assert outB.shape == (N, 8, H, W), outB.shape
    assert jnp.allclose(outB, refB, rtol=5e-2, atol=5e-2), \
        float(jnp.max(jnp.abs(outB - refB)))

    print("KERNEL_OK")
</pallas_src>

<mosaic_0001>
module attributes {stable_mosaic.version = 11 : i64} {
  func.func @_mm_stats_kernel(%arg0: i32, %arg1: i32, %arg2: memref<128x128xbf16, #tpu.memory_space<vmem>>, %arg3: memref<128x128xbf16, #tpu.memory_space<vmem>>, %arg4: memref<128x128xf32, #tpu.memory_space<vmem>>, %arg5: memref<8x128xf32, #tpu.memory_space<vmem>>, %arg6: memref<8x128xf32, #tpu.memory_space<vmem>>, %arg7: memref<128x128xf32, #tpu.memory_space<vmem>>) attributes {dimension_semantics = [#tpu.dimension_semantics<parallel>, #tpu.dimension_semantics<arbitrary>], iteration_bounds = array<i64: 1, 1>, scalar_prefetch = 0 : i64, scratch_operands = 1 : i64, tpu.core_type = #tpu.core_type<tc>, window_params = [{transform_indices = @transform_0, window_bounds = array<i64: 128, 128>}, {transform_indices = @transform_1, window_bounds = array<i64: 128, 128>}, {transform_indices = @transform_2, window_bounds = array<i64: 128, 128>}, {transform_indices = @transform_3, window_bounds = array<i64: 8, 128>}, {transform_indices = @transform_4, window_bounds = array<i64: 8, 128>}]} {
    %c0_i32 = arith.constant 0 : i32
    %0 = arith.cmpi eq, %arg1, %c0_i32 : i32
    %1 = arith.extui %0 : i1 to i32
    %c0_i32_0 = arith.constant 0 : i32
    %2 = arith.cmpi ne, %1, %c0_i32_0 : i32
    scf.if %2 {
      %cst_10 = arith.constant 0.000000e+00 : f32
      %12 = vector.broadcast %cst_10 : f32 to vector<128x128xf32>
      %c0_11 = arith.constant 0 : index
      %c0_12 = arith.constant 0 : index
      %13 = vector.load %arg7[%c0_11, %c0_12] : memref<128x128xf32, #tpu.memory_space<vmem>>, vector<128x128xf32>
      tpu.vector_store %arg7[%c0_11, %c0_12], %12 {strides = array<i32>} : memref<128x128xf32, #tpu.memory_space<vmem>>, vector<128x128xf32>,
    } else {
    }
    %c0 = arith.constant 0 : index
    %c0_1 = arith.constant 0 : index
    %3 = vector.load %arg7[%c0, %c0_1] : memref<128x128xf32, #tpu.memory_space<vmem>>, vector<128x128xf32>
    %c0_2 = arith.constant 0 : index
    %c0_3 = arith.constant 0 : index
    %4 = vector.load %arg2[%c0_2, %c0_3] : memref<128x128xbf16, #tpu.memory_space<vmem>>, vector<128x128xbf16>
    %c0_4 = arith.constant 0 : index
    %c0_5 = arith.constant 0 : index
    %5 = vector.load %arg3[%c0_4, %c0_5] : memref<128x128xbf16, #tpu.memory_space<vmem>>, vector<128x128xbf16>
    %cst = arith.constant dense<0.000000e+00> : vector<128x128xf32>
    %6 = tpu.matmul %4, %5, %cst {dimension_numbers = #tpu.dot_dimension_numbers<[1], [0], [0], [1], [0, 0, 1, 1], [], []>} : vector<128x128xbf16>, vector<128x128xbf16>, vector<128x128xf32> -> vector<128x128xf32>
    %7 = arith.addf %3, %6 : vector<128x128xf32>
    %c0_6 = arith.constant 0 : index
    %c0_7 = arith.constant 0 : index
    %8 = vector.load %arg7[%c0_6, %c0_7] : memref<128x128xf32, #tpu.memory_space<vmem>>, vector<128x128xf32>
    tpu.vector_store %arg7[%c0_6, %c0_7], %7 {strides = array<i32>} : memref<128x128xf32, #tpu.memory_space<vmem>>, vector<128x128xf32>,
    %c0_i32_8 = arith.constant 0 : i32
    %9 = arith.cmpi eq, %arg1, %c0_i32_8 : i32
    %10 = arith.extui %9 : i1 to i32
    %c0_i32_9 = arith.constant 0 : i32
    %11 = arith.cmpi ne, %10, %c0_i32_9 : i32
    scf.if %11 {
      %c0_10 = arith.constant 0 : index
      %c0_11 = arith.constant 0 : index
      %12 = vector.load %arg7[%c0_10, %c0_11] : memref<128x128xf32, #tpu.memory_space<vmem>>, vector<128x128xf32>
      %c0_12 = arith.constant 0 : index
      %c0_13 = arith.constant 0 : index
      %13 = vector.load %arg4[%c0_12, %c0_13] : memref<128x128xf32, #tpu.memory_space<vmem>>, vector<128x128xf32>
      tpu.vector_store %arg4[%c0_12, %c0_13], %12 {strides = array<i32>} : memref<128x128xf32, #tpu.memory_space<vmem>>, vector<128x128xf32>,
      %14 = vector.shape_cast %12 : vector<128x128xf32> to vector<16x8x128xf32>
      %cst_14 = arith.constant dense<0.000000e+00> : vector<8x128xf32>
      %15 = vector.multi_reduction <add>, %14, %cst_14 [0] : vector<16x8x128xf32> to vector<8x128xf32>
      %c0_15 = arith.constant 0 : index
      %c0_16 = arith.constant 0 : index
      %16 = vector.load %arg5[%c0_15, %c0_16] : memref<8x128xf32, #tpu.memory_space<vmem>>, vector<8x128xf32>
      tpu.vector_store %arg5[%c0_15, %c0_16], %15 {strides = array<i32>} : memref<8x128xf32, #tpu.memory_space<vmem>>, vector<8x128xf32>,
      %17 = arith.mulf %12, %12 : vector<128x128xf32>
      %18 = vector.shape_cast %17 : vector<128x128xf32> to vector<16x8x128xf32>
      %cst_17 = arith.constant dense<0.000000e+00> : vector<8x128xf32>
      %19 = vector.multi_reduction <add>, %18, %cst_17 [0] : vector<16x8x128xf32> to vector<8x128xf32>
      %c0_18 = arith.constant 0 : index
      %c0_19 = arith.constant 0 : index
      %20 = vector.load %arg6[%c0_18, %c0_19] : memref<8x128xf32, #tpu.memory_space<vmem>>, vector<8x128xf32>
      tpu.vector_store %arg6[%c0_18, %c0_19], %19 {strides = array<i32>} : memref<8x128xf32, #tpu.memory_space<vmem>>, vector<8x128xf32>,
    } else {
    }
    return
  }
  func.func @transform_0(%arg0: i32, %arg1: i32) -> (i32, i32) {
    %c0_i32 = arith.constant 0 : i32
    return %arg0, %arg1 : i32, i32
  }
  func.func @transform_1(%arg0: i32, %arg1: i32) -> (i32, i32) {
    %c0_i32 = arith.constant 0 : i32
    %c0_i32_0 = arith.constant 0 : i32
    return %arg1, %c0_i32 : i32, i32
  }
  func.func @transform_2(%arg0: i32, %arg1: i32) -> (i32, i32) {
    %c0_i32 = arith.constant 0 : i32
    %c0_i32_0 = arith.constant 0 : i32
    return %arg0, %c0_i32 : i32, i32
  }
  func.func @transform_3(%arg0: i32, %arg1: i32) -> (i32, i32) {
    %c0_i32 = arith.constant 0 : i32
    %c0_i32_0 = arith.constant 0 : i32
    return %arg0, %c0_i32 : i32, i32
  }
  func.func @transform_4(%arg0: i32, %arg1: i32) -> (i32, i32) {
    %c0_i32 = arith.constant 0 : i32
    %c0_i32_0 = arith.constant 0 : i32
    return %arg0, %c0_i32 : i32, i32
  }
}

</mosaic_0001>

<bundles_post_ra>
// kernel: tpu_custom_call.1
= control target key start
LH: loop header
LB: loop body
LE: loop exit
PB: predicated region body
PF: predicated region fallthrough
CT: control target
= control target key end

     0   :  { %10 = vsyncpa [#allocation4], 0  ;;  %s729_s0 = inlined_call_operand.hbm [shape: bf16[128,128], index: 0, kind: input, shape index: {}]   ;;  %s730_s1 = inlined_call_operand.hbm [shape: bf16[128,128], index: 1, kind: input, shape index: {}]   ;;  %s731_s2 = inlined_call_operand.hbm [shape: f32[128,128], index: 2, kind: output, shape index: {0}]   ;;  %s732_s3 = inlined_call_operand.hbm [shape: f32[8,128], index: 3, kind: output, shape index: {1}]   ;;  %s733_s4 = inlined_call_operand.hbm [shape: f32[8,128], index: 4, kind: output, shape index: {2}]  }
   0x1   :  { %11 = vsyncpa [#allocation7], 0 }
   0x2   :  { %12 = vsyncpa [#allocation5], 0 }
   0x3   :  { %13 = vsyncpa [#allocation10], 0  ;;  %s18_s17 = sshll.u32 %s729_s0, 4  ;;  %s668_s18 = smov [#allocation3]   ;;  %s19_s17 = int_to_ptr.hbm [resolvable:$true] %s18_s17 }
   0x4   :  { %s20_s19 = sshll.u32 %s668_s18, 4  ;;  %s31_s22 = sshll.u32 %s730_s1, 4  ;;  %s21_s19 = int_to_ptr.vmem [resolvable:$true] %s20_s19  ;;  %s32_s22 = int_to_ptr.hbm [resolvable:$true] %s31_s22 }
   0x5   :  { %s669_s23 = smov 64   ;;  %s670_s24 = smov 4  }
   0x6   :  { %26 = dma.hbm_to_vmem [thread:$0]  %s19_s17, 1024, %s21_s19, [#allocation4], %s669_s23, %s669_s23, %s670_s24  }
   0x7   :  { %s671_s25 = smov [#allocation6]  }
   0x8   :  { %s33_s26 = sshll.u32 %s671_s25, 4  ;;  %s34_s26 = int_to_ptr.vmem [resolvable:$true] %s33_s26 }
   0x9   :  { %39 = dma.hbm_to_vmem [thread:$0]  %s32_s22, 1024, %s34_s26, [#allocation7], %s669_s23, %s669_s23, %s670_s24  }
   0xa   :  { %660 = dma.done.wait [#allocation4], 1024  }
   0xb   :  { %661 = vsyncadd [#allocation4], 4294966272 }
   0xc   :  { %662 = dma.done.wait [#allocation7], 1024  }
   0xd   :  { %663 = vsyncadd [#allocation7], 4294966272  ;;  %v506_v0 = vld [vmem:[#allocation6 + $0x38] sm:$0xff]  ;;  %v505_v1 = vld [vmem:[#allocation6 + $0x30] sm:$0xff]  ;;  %s672_s0 = smov [#allocation8]   ;;  %s382_s29 = sshll.u32 %s731_s2, 4  ;;  %s383_s29 = int_to_ptr.hbm [resolvable:$true] %s382_s29 }
   0xe   :  { %212 = vmatpush.bf16.msra.mxu0 %v506_v0  ;;  %507 = vmatpush.bf16.msra.mxu1 %v506_v0  ;;  %v504_v2 = vld [vmem:[#allocation6 + $0x28] sm:$0xff]  ;;  %v503_v3 = vld [vmem:[#allocation6 + $0x20] sm:$0xff]  ;;  %v502_v4 = vld [vmem:[#allocation6 + $0x18] sm:$0xff]  ;;  %s380_s1 = sshll.u32 %s672_s0, 4  ;;  %s673_s30 = smov 128   ;;  %s381_s1 = int_to_ptr.vmem [resolvable:$true] %s380_s1 }
   0xf   :  { %508 = vmatpush.bf16.msra.mxu2 %v506_v0  ;;  %509 = vmatpush.bf16.msra.mxu3 %v506_v0  ;;  %v501_v5 = vld [vmem:[#allocation6 + $0x10] sm:$0xff]  ;;  %v500_v6 = vld [vmem:[#allocation6 + $0x8] sm:$0xff]  ;;  %v499_v7 = vld [vmem:[#allocation6] sm:$0xff]  ;;  %s674_s5 = smov 8   ;;  %s675_s2 = smov [#allocation9]  }
  0x10   :  { %v491_v8 = vld [vmem:[#allocation3] sm:$0xff]  ;;  %v493_v9 = vld [vmem:[#allocation3 + $0x10] sm:$0xff]  ;;  %v492_v12 = vld [vmem:[#allocation3 + $0x8] sm:$0xff]  ;;  %s394_s6 = sshll.u32 %s675_s2, 4  ;;  %s396_s9 = sshll.u32 %s732_s3, 4  ;;  %s395_s6 = int_to_ptr.vmem [resolvable:$true] %s394_s6  ;;  %s397_s9 = int_to_ptr.hbm [resolvable:$true] %s396_s9 }
  0x11   :  { %v495_v10 = vld [vmem:[#allocation3 + $0x20] sm:$0xff]  ;;  %v497_v11 = vld [vmem:[#allocation3 + $0x30] sm:$0xff]  ;;  %v494_v13 = vld [vmem:[#allocation3 + $0x18] sm:$0xff]  ;;  %s676_s10 = smov [#allocation11]   ;;  %s407_s14 = sshll.u32 %s733_s4, 4  ;;  %s408_s14 = int_to_ptr.hbm [resolvable:$true] %s407_s14 }
  0x12   :  { %213 = vmatpush.bf16.msra.mxu0 %v505_v1  ;;  %510 = vmatpush.bf16.msra.mxu1 %v505_v1  ;;  %v496_v14 = vld [vmem:[#allocation3 + $0x28] sm:$0xff]  ;;  %v498_v15 = vld [vmem:[#allocation3 + $0x38] sm:$0xff]  ;;  %s405_s11 = sshll.u32 %s676_s10, 4  ;;  %s406_s11 = int_to_ptr.vmem [resolvable:$true] %s405_s11 }
  0x13   :  { %511 = vmatpush.bf16.msra.mxu2 %v505_v1  ;;  %512 = vmatpush.bf16.msra.mxu3 %v505_v1 }
  0x16   :  { %214 = vmatpush.bf16.msra.mxu0 %v504_v2  ;;  %513 = vmatpush.bf16.msra.mxu1 %v504_v2 }
  0x17   :  { %514 = vmatpush.bf16.msra.mxu2 %v504_v2  ;;  %515 = vmatpush.bf16.msra.mxu3 %v504_v2 }
  0x1a   :  { %215 = vmatpush.bf16.msra.mxu0 %v503_v3  ;;  %516 = vmatpush.bf16.msra.mxu1 %v503_v3 }
  0x1b   :  { %517 = vmatpush.bf16.msra.mxu2 %v503_v3  ;;  %518 = vmatpush.bf16.msra.mxu3 %v503_v3 }
  0x1e   :  { %216 = vmatpush.bf16.msra.mxu0 %v502_v4  ;;  %519 = vmatpush.bf16.msra.mxu1 %v502_v4 }
  0x1f   :  { %520 = vmatpush.bf16.msra.mxu2 %v502_v4  ;;  %521 = vmatpush.bf16.msra.mxu3 %v502_v4 }
  0x22   :  { %217 = vmatpush.bf16.msra.mxu0 %v501_v5  ;;  %522 = vmatpush.bf16.msra.mxu1 %v501_v5 }
  0x23   :  { %523 = vmatpush.bf16.msra.mxu2 %v501_v5  ;;  %524 = vmatpush.bf16.msra.mxu3 %v501_v5 }
  0x26   :  { %218 = vmatpush.bf16.msra.mxu0 %v500_v6  ;;  %525 = vmatpush.bf16.msra.mxu1 %v500_v6 }
  0x27   :  { %526 = vmatpush.bf16.msra.mxu2 %v500_v6  ;;  %527 = vmatpush.bf16.msra.mxu3 %v500_v6 }
  0x2a   :  { %219 = vmatpush.bf16.msra.mxu0 %v499_v7  ;;  %528 = vmatpush.bf16.msra.mxu1 %v499_v7 }
  0x2b   :  { %529 = vmatpush.bf16.msra.mxu2 %v499_v7  ;;  %530 = vmatpush.bf16.msra.mxu3 %v499_v7 }
  0x2d   :  { %220 = vmatmul.bf16.vlgmr.msra.gmra.mxu0 %v491_v8  ;;  %230 = vmatmul.bf16.vlgmr.msra.gmra.mxu1 %v493_v9 }
  0x2e   :  { %240 = vmatmul.bf16.vlgmr.msra.gmra.mxu2 %v495_v10  ;;  %250 = vmatmul.bf16.vlgmr.msra.gmra.mxu3 %v497_v11 }
  0x3d   :  { %225 = vmatmul.bf16.gmra.mxu0 %v492_v12  ;;  %235 = vmatmul.bf16.gmra.mxu1 %v494_v13 }
  0x3e   :  { %245 = vmatmul.bf16.gmra.mxu2 %v496_v14  ;;  %255 = vmatmul.bf16.gmra.mxu3 %v498_v15 }
  0xaa   :  { %v221_v16 = vpop.f32.mrf.mxu0  ;;  %v231_v17 = vpop.f32.mrf.mxu1 }
  0xab   :  { %312 = vst [vmem:[#allocation8] sm:$0xff] %v221_v16  ;;  %v344_v27 = vmul.f32 %v221_v16, %v221_v16  ;;  %v348_v39 = vmul.f32 %v231_v17, %v231_v17 }
  0xac   :  { %316 = vst [vmem:[#allocation8 + $0x20] sm:$0xff] %v231_v17 }
  0xb1   :  { %v241_v18 = vpop.f32.mrf.mxu2  ;;  %v708_v19 = vpop.f32.mrf.mxu3 }
  0xb2   :  { %v223_v20 = vpop.f32.mrf.mxu0  ;;  %v233_v21 = vpop.f32.mrf.mxu1  ;;  %320 = vst [vmem:[#allocation8 + $0x40] sm:$0xff] %v241_v18  ;;  %v352_v53 = vmul.f32 %v241_v18, %v241_v18  ;;  %v356_v1 = vmul.f32 %v708_v19, %v708_v19 }
  0xb3   :  { %313 = vst [vmem:[#allocation8 + $0x8] sm:$0xff] %v223_v20  ;;  %v345_v26 = vmul.f32 %v223_v20, %v223_v20  ;;  %v328_v28 = vadd.f32 %v223_v20, %v221_v16  ;;  %v349_v42 = vmul.f32 %v233_v21, %v233_v21 }
  0xb4   :  { %317 = vst [vmem:[#allocation8 + $0x28] sm:$0xff] %v233_v21 }
  0xb5   :  { %324 = vst [vmem:[#allocation8 + $0x60] sm:$0xff] %v708_v19  ;;  %v360_v30 = vadd.f32 %v345_v26, %v344_v27 }
  0xb9   :  { %v243_v22 = vpop.f32.mrf.mxu2  ;;  %v711_v23 = vpop.f32.mrf.mxu3 }
  0xba   :  { %v226_v24 = vpop.f32.mrf.mxu0  ;;  %v236_v25 = vpop.f32.mrf.mxu1  ;;  %321 = vst [vmem:[#allocation8 + $0x48] sm:$0xff] %v243_v22  ;;  %v353_v56 = vmul.f32 %v243_v22, %v243_v22  ;;  %v357_v4 = vmul.f32 %v711_v23, %v711_v23 }
  0xbb   :  { %314 = vst [vmem:[#allocation8 + $0x10] sm:$0xff] %v226_v24  ;;  %v346_v29 = vmul.f32 %v226_v24, %v226_v24  ;;  %v329_v31 = vadd.f32 %v328_v28, %v226_v24  ;;  %v350_v45 = vmul.f32 %v236_v25, %v236_v25 }
  0xbc   :  { %318 = vst [vmem:[#allocation8 + $0x30] sm:$0xff] %v236_v25 }
  0xbd   :  { %325 = vst [vmem:[#allocation8 + $0x68] sm:$0xff] %v711_v23  ;;  %v361_v36 = vadd.f32 %v360_v30, %v346_v29 }
  0xc1   :  { %v246_v32 = vpop.f32.mrf.mxu2  ;;  %v256_v33 = vpop.f32.mrf.mxu3 }
  0xc2   :  { %v228_v34 = vpop.f32.mrf.mxu0  ;;  %v238_v35 = vpop.f32.mrf.mxu1  ;;  %322 = vst [vmem:[#allocation8 + $0x50] sm:$0xff] %v246_v32  ;;  %v354_v60 = vmul.f32 %v246_v32, %v246_v32  ;;  %v358_v8 = vmul.f32 %v256_v33, %v256_v33 }
  0xc3   :  { %315 = vst [vmem:[#allocation8 + $0x18] sm:$0xff] %v228_v34  ;;  %v330_v37 = vadd.f32 %v329_v31, %v228_v34  ;;  %v347_v38 = vmul.f32 %v228_v34, %v228_v34  ;;  %v351_v51 = vmul.f32 %v238_v35, %v238_v35 }
  0xc4   :  { %319 = vst [vmem:[#allocation8 + $0x38] sm:$0xff] %v238_v35 }
  0xc5   :  { %v331_v40 = vadd.f32 %v330_v37, %v231_v17  ;;  %v362_v41 = vadd.f32 %v361_v36, %v347_v38  ;;  %326 = vst [vmem:[#allocation8 + $0x70] sm:$0xff] %v256_v33 }
  0xc7   :  { %v363_v43 = vadd.f32 %v362_v41, %v348_v39  ;;  %v332_v44 = vadd.f32 %v331_v40, %v233_v21 }
  0xc9   :  { %v333_v46 = vadd.f32 %v332_v44, %v236_v25  ;;  %v364_v47 = vadd.f32 %v363_v43, %v349_v42  ;;  %v248_v48 = vpop.f32.mrf.mxu2  ;;  %v258_v49 = vpop.f32.mrf.mxu3 }
  0xca   :  { %323 = vst [vmem:[#allocation8 + $0x58] sm:$0xff] %v248_v48  ;;  %v355_v0 = vmul.f32 %v248_v48, %v248_v48  ;;  %v359_v12 = vmul.f32 %v258_v49, %v258_v49 }
  0xcb   :  { %v334_v50 = vadd.f32 %v333_v46, %v238_v35  ;;  %v365_v52 = vadd.f32 %v364_v47, %v350_v45  ;;  %327 = vst [vmem:[#allocation8 + $0x78] sm:$0xff] %v258_v49 }
  0xcc   :  { %388 = dma.vmem_to_hbm [thread:$0]  %s381_s1, 2048, %s383_s29, [#allocation5], %s673_s30, %s673_s30, %s674_s5  }
  0xcd   :  { %v335_v54 = vadd.f32 %v334_v50, %v241_v18  ;;  %v366_v55 = vadd.f32 %v365_v52, %v351_v51 }
  0xcf   :  { %v367_v57 = vadd.f32 %v366_v55, %v352_v53  ;;  %v336_v58 = vadd.f32 %v335_v54, %v243_v22 }
  0xd1   :  { %v337_v59 = vadd.f32 %v336_v58, %v246_v32  ;;  %v368_v61 = vadd.f32 %v367_v57, %v353_v56 }
  0xd3   :  { %v369_v62 = vadd.f32 %v368_v61, %v354_v60  ;;  %v338_v63 = vadd.f32 %v337_v59, %v248_v48 }
  0xd5   :  { %v339_v2 = vadd.f32 %v338_v63, %v708_v19  ;;  %v370_v3 = vadd.f32 %v369_v62, %v355_v0 }
  0xd7   :  { %v371_v5 = vadd.f32 %v370_v3, %v356_v1  ;;  %v340_v6 = vadd.f32 %v339_v2, %v711_v23 }
  0xd9   :  { %v341_v7 = vadd.f32 %v340_v6, %v256_v33  ;;  %v372_v9 = vadd.f32 %v371_v5, %v357_v4 }
  0xdb   :  { %v373_v10 = vadd.f32 %v372_v9, %v358_v8  ;;  %v342_v11 = vadd.f32 %v341_v7, %v258_v49 }
  0xdd   :  { %v374_v13 = vadd.f32 %v373_v10, %v359_v12  ;;  %343 = vst [vmem:[#allocation9] sm:$0xff] %v342_v11 }
  0xde   :  { %399 = dma.vmem_to_hbm [thread:$0]  %s395_s6, 128, %s397_s9, [#allocation10]  }
  0xdf   :  { %375 = vst [vmem:[#allocation11] sm:$0xff] %v374_v13 }
  0xe0   :  { %410 = dma.vmem_to_hbm [thread:$0]  %s406_s11, 128, %s408_s14, [#allocation10]  }
  0xe1   :  { %664 = dma.done.wait [#allocation5], 2048  }
  0xe2   :  { %665 = vsyncadd [#allocation5], 4294965248 }
  0xe3   :  { %666 = dma.done.wait [#allocation10], 256  }
  0xe4   :  { %667 = vsyncadd [#allocation10], 4294967040 }
  0xe5   :  { %423 = vsyncpa [#allocation4], 1 }
  0xe6   :  { %424 = vsyncpa [#allocation7], 1 }
  0xe7   :  { %425 = vsyncpa [#allocation5], 1 }
  0xe8   :  { %426 = vsyncpa [#allocation10], 1 }

</bundles_post_ra>
